<compile_context>
chip_gen: v6e
topology: v6e:2x2x1
jax: 0.10.0
libtpu: 0.0.40
codegen_flags: <defaults>
</compile_context>

<pallas_src>
import functools

import jax
import jax.numpy as jnp
from jax.experimental import pallas as pl
from jax.experimental.pallas import tpu as pltpu


def _round_up(x, m):
    return ((x + m - 1) // m) * m


def _vmem_capacity_bytes():
    try:
        return int(pltpu.get_tpu_info().vmem_capacity_bytes)
    except Exception:
        return 64 * 1024 * 1024  # conservative fallback (v7x per-TC VMEM)


def _pick_row_tile_split(m):
    """Row tile (multiple of 8, <=512) that yields >=2 grid steps when m > 8,
    so the 'parallel' row axis can be sharded across both v7x TensorCores."""
    if m <= 8:
        return 8
    return min(512, _round_up((m + 1) // 2, 8))


# ---------------------------------------------------------------------------
# Kernels
# ---------------------------------------------------------------------------

def _fused_body(idx_ref, tab_ref, w1_ref, b1_ref, w2, b2_ref, o_ref):
    tm = idx_ref.shape[0]
    v_pad = tab_ref.shape[0]
    # In-kernel embedding gather as one-hot @ table on the MXU (exact).
    # Padded / out-of-range indices select an all-zero padded row.
    eq = idx_ref[...] == jax.lax.broadcasted_iota(jnp.int32, (tm, v_pad), 1)
    onehot = jnp.where(eq, 1.0, 0.0).astype(tab_ref.dtype)
    x = jnp.dot(onehot, tab_ref[...], preferred_element_type=jnp.float32)
    # Linear -> ReLU (f32 accumulation, f32 bias).
    h = jnp.maximum(
        jnp.dot(x.astype(w1_ref.dtype), w1_ref[...],
                preferred_element_type=jnp.float32) + b1_ref[...], 0.0)
    # Second Linear.  h goes to the MXU in bf16 (see precision note at top).
    o = jnp.dot(h.astype(w2.dtype), w2, preferred_element_type=jnp.float32)
    o_ref[...] = (o + b2_ref[...]).astype(o_ref.dtype)


def _resident_kernel(idx_ref, tab_ref, w1_ref, b1_ref, w2_ref, b2_ref, o_ref):
    # 1-D grid over row tiles; every weight fully VMEM-resident (single copy).
    _fused_body(idx_ref, tab_ref, w1_ref, b1_ref, w2_ref[...], b2_ref, o_ref)


def _tiled_kernel(idx_ref, tab_ref, w1_ref, b1_ref, w2_ref, b2_ref, o_ref):
    # 2-D grid (row tiles, output-column tiles); W2 arrives pre-tiled as
    # (1, P_pad, tn) contiguous blocks.  h is recomputed per column tile (cheap in
    # the W2-streaming, memory-bound regime) so both grid axes are independent
    # ("parallel") -> megacore-shardable and no scratch-carry hazard.
    _fused_body(idx_ref, tab_ref, w1_ref, b1_ref, w2_ref[0], b2_ref, o_ref)


# ---------------------------------------------------------------------------
# pallas_call wrappers
# ---------------------------------------------------------------------------

@functools.partial(jax.jit, static_argnames=("out_dim", "vmem_cap"))
def _forward_resident(idx_flat, table, w1, b1, w2, b2, *, out_dim, vmem_cap):
    m = idx_flat.shape[0]
    v_pad, e_pad = table.shape
    p_pad = w1.shape[1]
    o_pad = w2.shape[1]

    tm = _pick_row_tile_split(m)
    m_pad = _round_up(m, tm)
    idx = idx_flat.astype(jnp.int32)
    if m_pad != m:
        idx = jnp.pad(idx, (0, m_pad - m))          # pad rows gather row 0; sliced off
    idx2d = idx.reshape(m_pad, 1)

    weight_bytes = ((v_pad * e_pad + e_pad * p_pad + p_pad * o_pad) * 2
                    + (p_pad + o_pad) * 4)
    need = (weight_bytes
            + 2 * tm * 4                               # idx tile (double-buffered)
            + 2 * tm * o_pad * 2                       # output tile (double-buffered)
            + tm * (v_pad + e_pad + 2 * p_pad) * 4)    # in-body intermediates
    vmem_limit = int(min(max(need + (4 << 20), 4 << 20), int(0.92 * vmem_cap)))

    flops = 2 * m_pad * (v_pad * e_pad + e_pad * p_pad + p_pad * o_pad)
    bytes_accessed = m_pad * 4 + weight_bytes + m_pad * o_pad * 2

    out = pl.pallas_call(
        _resident_kernel,
        out_shape=jax.ShapeDtypeStruct((m_pad, o_pad), jnp.bfloat16),
        grid=(m_pad // tm,),
        in_specs=[
            pl.BlockSpec((tm, 1), lambda i: (i, 0)),            # indices (blocked)
            pl.BlockSpec(memory_space=pltpu.MemorySpace.VMEM),  # table (resident)
            pl.BlockSpec(memory_space=pltpu.MemorySpace.VMEM),  # W1 (resident)
            pl.BlockSpec(memory_space=pltpu.MemorySpace.VMEM),  # b1 (resident)
            pl.BlockSpec(memory_space=pltpu.MemorySpace.VMEM),  # W2 (resident)
            pl.BlockSpec(memory_space=pltpu.MemorySpace.VMEM),  # b2 (resident)
        ],
        out_specs=pl.BlockSpec((tm, o_pad), lambda i: (i, 0)),
        compiler_params=pltpu.CompilerParams(
            dimension_semantics=("parallel",),
            vmem_limit_bytes=vmem_limit,
        ),
        cost_estimate=pl.CostEstimate(
            flops=flops, transcendentals=0, bytes_accessed=bytes_accessed),
    )(idx2d, table, w1, b1, w2, b2)

    if m_pad != m or o_pad != out_dim:
        out = out[:m, :out_dim]
    return out


@functools.partial(jax.jit, static_argnames=("out_dim", "vmem_cap"))
def _forward_tiled(idx_flat, table, w1, b1, w2t, b2, *, out_dim, vmem_cap):
    m = idx_flat.shape[0]
    v_pad, e_pad = table.shape
    p_pad = w1.shape[1]
    n_tiles, _, tn = w2t.shape
    o_pad = n_tiles * tn

    tm = min(512, _round_up(max(m, 1), 8))   # few row tiles -> few W2 re-streams
    m_pad = _round_up(m, tm)
    idx = idx_flat.astype(jnp.int32)
    if m_pad != m:
        idx = jnp.pad(idx, (0, m_pad - m))
    idx2d = idx.reshape(m_pad, 1)

    n_row = m_pad // tm
    resident_bytes = (v_pad * e_pad + e_pad * p_pad) * 2 + p_pad * 4
    need = (resident_bytes
            + 2 * tm * 4                       # idx tile
            + 2 * (p_pad * tn * 2 + tn * 4)    # W2/b2 column tiles (double-buffered)
            + 2 * tm * tn * 2                  # output tile
            + tm * (v_pad + e_pad + 2 * p_pad) * 4)
    vmem_limit = int(min(max(need + (4 << 20), 4 << 20), int(0.92 * vmem_cap)))

    # h (and the gather) are recomputed per column tile; W2 is re-streamed per row tile.
    flops = (2 * m_pad * n_tiles * (v_pad * e_pad + e_pad * p_pad)
             + 2 * m_pad * p_pad * o_pad)
    bytes_accessed = (m_pad * 4 + resident_bytes + m_pad * o_pad * 2
                      + n_row * (p_pad * o_pad * 2 + o_pad * 4))

    out = pl.pallas_call(
        _tiled_kernel,
        out_shape=jax.ShapeDtypeStruct((m_pad, o_pad), jnp.bfloat16),
        grid=(n_row, n_tiles),
        in_specs=[
            pl.BlockSpec((tm, 1), lambda i, j: (i, 0)),          # indices
            pl.BlockSpec(memory_space=pltpu.MemorySpace.VMEM),   # table (resident)
            pl.BlockSpec(memory_space=pltpu.MemorySpace.VMEM),   # W1 (resident)
            pl.BlockSpec(memory_space=pltpu.MemorySpace.VMEM),   # b1 (resident)
            pl.BlockSpec((1, p_pad, tn), lambda i, j: (j, 0, 0)),  # W2 tile (contiguous)
            pl.BlockSpec((1, tn), lambda i, j: (0, j)),          # b2 tile
        ],
        out_specs=pl.BlockSpec((tm, tn), lambda i, j: (i, j)),
        compiler_params=pltpu.CompilerParams(
            dimension_semantics=("parallel", "parallel"),
            vmem_limit_bytes=vmem_limit,
        ),
        cost_estimate=pl.CostEstimate(
            flops=flops, transcendentals=0, bytes_accessed=bytes_accessed),
    )(idx2d, table, w1, b1, w2t, b2)

    if m_pad != m or o_pad != out_dim:
        out = out[:m, :out_dim]
    return out


# ---------------------------------------------------------------------------
# Module
# ---------------------------------------------------------------------------

class PromptEncoderPallas:
    """JAX/Pallas re-implementation of PromptEncoder's forward pass."""

    def __init__(self, type, length, projection, embed_dim, proj_dim, layers,
                 vocab_size, *, key, param_dtype=jnp.bfloat16,
                 force_tiled=False, max_tn=None):
        # `force_tiled` / `max_tn` are test/override knobs for the W2 layout choice.
        self.prefix_projection = projection
        prompt_vocab_size = length          # mirrors the reference __init__ (type == 'prefix')
        out_dim = layers * 2 * embed_dim
        self.embed_dim = embed_dim
        self.out_dim = out_dim
        self.param_dtype = param_dtype
        self._vmem_cap = _vmem_capacity_bytes()

        if self.prefix_projection:
            k_emb, k_w1, k_b1, k_w2, k_b2 = jax.random.split(key, 5)
            emb = jax.random.normal(k_emb, (prompt_vocab_size, embed_dim), jnp.float32)
            w1 = jax.random.normal(k_w1, (embed_dim, proj_dim), jnp.float32) * 0.05
            b1 = jax.random.normal(k_b1, (proj_dim,), jnp.float32) * 0.01
            w2 = jax.random.normal(k_w2, (proj_dim, out_dim), jnp.float32) * 0.05
            b2 = jax.random.normal(k_b2, (out_dim,), jnp.float32) * 0.01

            v_pad = _round_up(prompt_vocab_size, 16)
            e_pad = _round_up(embed_dim, 128)
            p_pad = _round_up(proj_dim, 128)

            # Generation-aware layout planning: keep W2 fully VMEM-resident when the
            # budget allows (W2 read from HBM exactly once), else pre-tile contiguously.
            budget = int(0.70 * self._vmem_cap)
            tm_max = 512
            base_need = ((v_pad * e_pad + e_pad * p_pad) * 2 + p_pad * 4
                         + 2 * tm_max * 4
                         + tm_max * (v_pad + e_pad + 2 * p_pad) * 4)
            o_pad_full = _round_up(out_dim, 128)
            resident_need = (base_need + p_pad * o_pad_full * 2 + o_pad_full * 4
                             + 2 * tm_max * o_pad_full * 2)

            if (not force_tiled) and resident_need <= budget:
                self._w2_layout = "resident"
                o_pad = o_pad_full
                w2_dev = (jnp.zeros((p_pad, o_pad), param_dtype)
                          .at[:proj_dim, :out_dim].set(w2.astype(param_dtype)))
            else:
                self._w2_layout = "tiled"
                o_pad = _round_up(out_dim, 512)     # keep tn >= 512 always possible
                tn = None
                for cand in (2048, 1024, 512):
                    if max_tn is not None and cand > max_tn:
                        continue
                    if o_pad % cand:
                        continue
                    need = (base_need + 2 * (p_pad * cand * 2 + cand * 4)
                            + 2 * tm_max * cand * 2)
                    if need <= budget:
                        tn = cand
                        break
                if tn is None:
                    # TODO(synk): if even a 512-wide W2 tile overflows VMEM (huge
                    # proj_dim), the P axis would need tiling as well.
                    tn = 512
                w2_full = (jnp.zeros((p_pad, o_pad), param_dtype)
                           .at[:proj_dim, :out_dim].set(w2.astype(param_dtype)))
                # Pre-tiled, fully contiguous column tiles: (O/tn, P, tn).
                w2_dev = w2_full.reshape(p_pad, o_pad // tn, tn).transpose(1, 0, 2)

            self._V_pad, self._E_pad, self._P_pad, self._O_pad = v_pad, e_pad, p_pad, o_pad
            # Pre-padded, lane-dense device params (padding rows/cols are zero -> exact).
            self.table = (jnp.zeros((v_pad, e_pad), param_dtype)
                          .at[:prompt_vocab_size, :embed_dim].set(emb.astype(param_dtype)))
            self.w1 = (jnp.zeros((e_pad, p_pad), param_dtype)
                       .at[:embed_dim, :proj_dim].set(w1.astype(param_dtype)))
            self.b1 = jnp.zeros((1, p_pad), jnp.float32).at[0, :proj_dim].set(b1)
            self.w2 = w2_dev
            self.b2 = jnp.zeros((1, o_pad), jnp.float32).at[0, :out_dim].set(b2)

            # f32 copies of the (bf16-rounded) params for the pure-JAX reference.
            self._ref = dict(
                table=emb.astype(param_dtype).astype(jnp.float32),
                w1=w1.astype(param_dtype).astype(jnp.float32),
                b1=b1,
                w2=w2.astype(param_dtype).astype(jnp.float32),
                b2=b2)
        elif type == "prefix":
            (k_emb,) = jax.random.split(key, 1)
            emb = jax.random.normal(k_emb, (prompt_vocab_size, out_dim), jnp.float32)
            self.embedding = emb.astype(param_dtype)
            self._ref = dict(table=self.embedding.astype(jnp.float32))
        else:
            raise ValueError(
                "projection=False requires type == 'prefix' "
                "(the reference module defines no embedding otherwise)")

    def __call__(self, prefix):
        # prefix: int indices, shape (B, L)
        if not self.prefix_projection:
            # Pure embedding lookup; XLA's native gather is already optimal here.
            return jnp.take(self.embedding, prefix, axis=0)
        B, L = prefix.shape
        idx_flat = prefix.reshape(B * L).astype(jnp.int32)
        if self._w2_layout == "resident":
            out2d = _forward_resident(idx_flat, self.table, self.w1, self.b1,
                                      self.w2, self.b2,
                                      out_dim=self.out_dim, vmem_cap=self._vmem_cap)
        else:
            out2d = _forward_tiled(idx_flat, self.table, self.w1, self.b1,
                                   self.w2, self.b2,
                                   out_dim=self.out_dim, vmem_cap=self._vmem_cap)
        return out2d.reshape(B, L, self.out_dim)


def _reference(enc, prefix):
    """Pure-JAX f32 reference (same bf16-rounded parameter values, f32 math)."""
    p = enc._ref
    x = jnp.take(p["table"], prefix, axis=0)
    if not enc.prefix_projection:
        return x
    h = jnp.maximum(x @ p["w1"] + p["b1"], 0.0)
    return h @ p["w2"] + p["b2"]


if __name__ == "__main__":
    key = jax.random.PRNGKey(0)
    k_params, k_idx, k_idx2 = jax.random.split(key, 3)

    # --- Test 1: projection MLP, W2 fully VMEM-resident (typical small module) ---
    length, embed_dim, proj_dim, layers, batch = 8, 32, 64, 2, 2
    enc = PromptEncoderPallas("prefix", length, True, embed_dim, proj_dim, layers,
                              vocab_size=1000, key=k_params)
    prefix = jax.random.randint(k_idx, (batch, length), 0, length, dtype=jnp.int32)
    out = jax.block_until_ready(enc(prefix))
    ref = _reference(enc, prefix)
    assert out.shape == (batch, length, layers * 2 * embed_dim), out.shape
    err = float(jnp.max(jnp.abs(out.astype(jnp.float32) - ref)))
    assert err < 2e-2, f"resident path error {err}"

    # --- Test 2: projection MLP, forced streamed-W2 (tiled) path, 2-D grid ---
    length2, embed2, proj2, layers2, batch2 = 16, 128, 128, 4, 2
    enc_t = PromptEncoderPallas("prefix", length2, True, embed2, proj2, layers2,
                                vocab_size=1000, key=k_params,
                                force_tiled=True, max_tn=512)
    prefix2 = jax.random.randint(k_idx2, (batch2, length2), 0, length2, dtype=jnp.int32)
    out_t = jax.block_until_ready(enc_t(prefix2))
    ref_t = _reference(enc_t, prefix2)
    assert out_t.shape == (batch2, length2, layers2 * 2 * embed2), out_t.shape
    err_t = float(jnp.max(jnp.abs(out_t.astype(jnp.float32) - ref_t)))
    assert err_t < 2e-2, f"tiled path error {err_t}"

    # --- Test 3: projection=False (embedding-only) path ---
    enc_e = PromptEncoderPallas("prefix", length, False, embed_dim, proj_dim, layers,
                                vocab_size=1000, key=k_params)
    out_e = jax.block_until_ready(enc_e(prefix))
    assert out_e.shape == (batch, length, layers * 2 * embed_dim), out_e.shape

    print("KERNEL_OK")
</pallas_src>

<mosaic_0001>
module attributes {stable_mosaic.version = 11 : i64} {
  func.func @_resident_kernel(%arg0: i32, %arg1: memref<8x1xi32, #tpu.memory_space<vmem>>, %arg2: memref<16x128xbf16, #tpu.memory_space<vmem>>, %arg3: memref<128x128xbf16, #tpu.memory_space<vmem>>, %arg4: memref<1x128xf32, #tpu.memory_space<vmem>>, %arg5: memref<128x128xbf16, #tpu.memory_space<vmem>>, %arg6: memref<1x128xf32, #tpu.memory_space<vmem>>, %arg7: memref<8x128xbf16, #tpu.memory_space<vmem>>) attributes {dimension_semantics = [#tpu.dimension_semantics<parallel>], iteration_bounds = array<i64: 2>, scalar_prefetch = 0 : i64, scratch_operands = 0 : i64, tpu.core_type = #tpu.core_type<tc>, window_params = [{transform_indices = @transform_0, window_bounds = array<i64: 8, 1>}, {pipeline_mode = #tpu.pipeline_mode<synchronous>, transform_indices = @transform_1, window_bounds = array<i64: 16, 128>}, {pipeline_mode = #tpu.pipeline_mode<synchronous>, transform_indices = @transform_2, window_bounds = array<i64: 128, 128>}, {pipeline_mode = #tpu.pipeline_mode<synchronous>, transform_indices = @transform_3, window_bounds = array<i64: 1, 128>}, {pipeline_mode = #tpu.pipeline_mode<synchronous>, transform_indices = @transform_4, window_bounds = array<i64: 128, 128>}, {pipeline_mode = #tpu.pipeline_mode<synchronous>, transform_indices = @transform_5, window_bounds = array<i64: 1, 128>}, {transform_indices = @transform_6, window_bounds = array<i64: 8, 128>}]} {
    %c0 = arith.constant 0 : index
    %c0_0 = arith.constant 0 : index
    %0 = vector.load %arg5[%c0, %c0_0] : memref<128x128xbf16, #tpu.memory_space<vmem>>, vector<128x128xbf16>
    %c0_1 = arith.constant 0 : index
    %c0_2 = arith.constant 0 : index
    %1 = vector.load %arg1[%c0_1, %c0_2] : memref<8x1xi32, #tpu.memory_space<vmem>>, vector<8x1xi32>
    %2 = tpu.iota {dimensions = array<i32: 1>} : vector<8x16xi32>
    %3 = vector.broadcast %1 : vector<8x1xi32> to vector<8x16xi32>
    %4 = arith.cmpi eq, %3, %2 : vector<8x16xi32>
    %cst = arith.constant 1.000000e+00 : f32
    %cst_3 = arith.constant 0.000000e+00 : f32
    %5 = vector.broadcast %cst : f32 to vector<8x16xf32>
    %6 = vector.broadcast %cst_3 : f32 to vector<8x16xf32>
    %7 = arith.select %4, %5, %6 : vector<8x16xi1>, vector<8x16xf32>
    %8 = arith.truncf %7 : vector<8x16xf32> to vector<8x16xbf16>
    %c0_4 = arith.constant 0 : index
    %c0_5 = arith.constant 0 : index
    %9 = vector.load %arg2[%c0_4, %c0_5] : memref<16x128xbf16, #tpu.memory_space<vmem>>, vector<16x128xbf16>
    %cst_6 = arith.constant dense<0.000000e+00> : vector<8x128xf32>
    %10 = tpu.matmul %8, %9, %cst_6 {dimension_numbers = #tpu.dot_dimension_numbers<[1], [0], [0], [1], [0, 0, 1, 1], [], []>} : vector<8x16xbf16>, vector<16x128xbf16>, vector<8x128xf32> -> vector<8x128xf32>
    %11 = arith.truncf %10 : vector<8x128xf32> to vector<8x128xbf16>
    %c0_7 = arith.constant 0 : index
    %c0_8 = arith.constant 0 : index
    %12 = vector.load %arg3[%c0_7, %c0_8] : memref<128x128xbf16, #tpu.memory_space<vmem>>, vector<128x128xbf16>
    %cst_9 = arith.constant dense<0.000000e+00> : vector<8x128xf32>
    %13 = tpu.matmul %11, %12, %cst_9 {dimension_numbers = #tpu.dot_dimension_numbers<[1], [0], [0], [1], [0, 0, 1, 1], [], []>} : vector<8x128xbf16>, vector<128x128xbf16>, vector<8x128xf32> -> vector<8x128xf32>
    %c0_10 = arith.constant 0 : index
    %c0_11 = arith.constant 0 : index
    %14 = vector.load %arg4[%c0_10, %c0_11] : memref<1x128xf32, #tpu.memory_space<vmem>>, vector<1x128xf32>
    %15 = vector.broadcast %14 : vector<1x128xf32> to vector<8x128xf32>
    %16 = arith.addf %13, %15 : vector<8x128xf32>
    %cst_12 = arith.constant 0.000000e+00 : f32
    %17 = vector.broadcast %cst_12 : f32 to vector<8x128xf32>
    %18 = arith.maximumf %16, %17 : vector<8x128xf32>
    %19 = arith.truncf %18 : vector<8x128xf32> to vector<8x128xbf16>
    %cst_13 = arith.constant dense<0.000000e+00> : vector<8x128xf32>
    %20 = tpu.matmul %19, %0, %cst_13 {dimension_numbers = #tpu.dot_dimension_numbers<[1], [0], [0], [1], [0, 0, 1, 1], [], []>} : vector<8x128xbf16>, vector<128x128xbf16>, vector<8x128xf32> -> vector<8x128xf32>
    %c0_14 = arith.constant 0 : index
    %c0_15 = arith.constant 0 : index
    %21 = vector.load %arg6[%c0_14, %c0_15] : memref<1x128xf32, #tpu.memory_space<vmem>>, vector<1x128xf32>
    %22 = vector.broadcast %21 : vector<1x128xf32> to vector<8x128xf32>
    %23 = arith.addf %20, %22 : vector<8x128xf32>
    %24 = arith.truncf %23 : vector<8x128xf32> to vector<8x128xbf16>
    %c0_16 = arith.constant 0 : index
    %c0_17 = arith.constant 0 : index
    %25 = vector.load %arg7[%c0_16, %c0_17] : memref<8x128xbf16, #tpu.memory_space<vmem>>, vector<8x128xbf16>
    tpu.vector_store %arg7[%c0_16, %c0_17], %24 {strides = array<i32>} : memref<8x128xbf16, #tpu.memory_space<vmem>>, vector<8x128xbf16>,
    return
  }
  func.func @transform_0(%arg0: i32) -> (i32, i32) {
    %c0_i32 = arith.constant 0 : i32
    %c0_i32_0 = arith.constant 0 : i32
    return %arg0, %c0_i32 : i32, i32
  }
  func.func @transform_1(%arg0: i32) -> (i32, i32) {
    %c0_i32 = arith.constant 0 : i32
    %c0_i32_0 = arith.constant 0 : i32
    %c0_i32_1 = arith.constant 0 : i32
    return %c0_i32, %c0_i32_0 : i32, i32
  }
  func.func @transform_2(%arg0: i32) -> (i32, i32) {
    %c0_i32 = arith.constant 0 : i32
    %c0_i32_0 = arith.constant 0 : i32
    %c0_i32_1 = arith.constant 0 : i32
    return %c0_i32, %c0_i32_0 : i32, i32
  }
  func.func @transform_3(%arg0: i32) -> (i32, i32) {
    %c0_i32 = arith.constant 0 : i32
    %c0_i32_0 = arith.constant 0 : i32
    %c0_i32_1 = arith.constant 0 : i32
    return %c0_i32, %c0_i32_0 : i32, i32
  }
  func.func @transform_4(%arg0: i32) -> (i32, i32) {
    %c0_i32 = arith.constant 0 : i32
    %c0_i32_0 = arith.constant 0 : i32
    %c0_i32_1 = arith.constant 0 : i32
    return %c0_i32, %c0_i32_0 : i32, i32
  }
  func.func @transform_5(%arg0: i32) -> (i32, i32) {
    %c0_i32 = arith.constant 0 : i32
    %c0_i32_0 = arith.constant 0 : i32
    %c0_i32_1 = arith.constant 0 : i32
    return %c0_i32, %c0_i32_0 : i32, i32
  }
  func.func @transform_6(%arg0: i32) -> (i32, i32) {
    %c0_i32 = arith.constant 0 : i32
    %c0_i32_0 = arith.constant 0 : i32
    return %arg0, %c0_i32 : i32, i32
  }
}

</mosaic_0001>

<bundles_post_ra>
// kernel: _forward_resident.1
= control target key start
LH: loop header
LB: loop body
LE: loop exit
PB: predicated region body
PF: predicated region fallthrough
CT: control target
= control target key end

     0   :  { %11 = vsyncpa [#allocation3], 0  ;;  %s1182_s0 = inlined_call_operand.vmem [shape: s32[16,1], index: 0, kind: input, shape index: {}]   ;;  %s1183_s1 = inlined_call_operand.vmem [shape: bf16[16,128], index: 1, kind: input, shape index: {}]   ;;  %s1184_s2 = inlined_call_operand.hbm [shape: bf16[128,128], index: 2, kind: input, shape index: {}]   ;;  %s1185_s3 = inlined_call_operand.vmem [shape: f32[1,128], index: 3, kind: input, shape index: {}]   ;;  %s1186_s4 = inlined_call_operand.hbm [shape: bf16[128,128], index: 4, kind: input, shape index: {}]   ;;  %s1187_s5 = inlined_call_operand.vmem [shape: f32[1,128], index: 5, kind: input, shape index: {}]   ;;  %s1188_s6 = inlined_call_operand.hbm [shape: bf16[16,128], index: 6, kind: output, shape index: {}]  }
   0x1   :  { %12 = vsyncpa [#allocation6], 0 }
   0x2   :  { %13 = vsyncpa [#allocation4], 0 }
   0x3   :  { %15 = vsyncpa [#allocation4 + $0x1], 0  ;;  %s1009_s21 = smov 0   ;;  %s1011_s22 = smov 0  }
   0x4   :  { %s1013_s23 = smov 0   ;;  %s1015_s24 = smov 0  }
   0x5 LB: > { %s1030_s25 = sadd.s32 4294967295, %s964_s24   ;;  %s661_s26 = sadd.s32 4294967294, %s964_s24   ;;  %s964_s24 = sphi %s1015_s24, %s1202_s24   ;;  %s960_s23 = sphi %s1013_s23, %s1201_s23   ;;  %s956_s22 = sphi %s1011_s22, %s1200_s22   ;;  %s952_s21 = sphi %s1009_s21, %s1199_s21  }
   0x6   : > { %s1034_s27 = sadd.s32 1, %s964_s24   ;;  %s159_s28 = sadd.s32 1, %s960_s23 }
   0x7   : > { %s156_s29 = ssub.s32 %s964_s24, %s1034_s27  ;;  %p169_p0 = scmp.ne.s32.totalorder %s960_s23, %s956_s22 }
   0x8   : > { %p157_p1 = scmp.eq.s32.totalorder %s156_s29, 0  ;;  %p170_p2 = scmp.eq.s32.totalorder %s1030_s25, 1 }
   0x9   : > { %p175_p3 = scmp.ne.s32.totalorder %s956_s22, %s952_s21  ;;  %p176_p4 = scmp.eq.s32.totalorder %s661_s26, 1 }
   0xa   : > { %s1045_s30 = scalar_select %p157_p1, %s960_s23, %s159_s28  }
   0xb   : > { %p1047_p5 = por %p170_p2, %p169_p0  ;;  %p1051_p6 = por %p176_p4, %p175_p3 }
   0xc   : > { %p662_p7 = scmp.ge.s32.totalorder %s964_s24, 1  ;;  %p183_p8 = scmp.lt.s32.totalorder %s964_s24, 3 }
   0xd   : > { %s1191_s8 = scalar_select %p1051_p6, 1, 0 }
   0xe   : > { %p1189_p9 = scmp.eq.s32.totalorder %s1030_s25, 0  ;;  %p1058_p10 = pnand %p662_p7, %p183_p8 }
   0xf   : > { %s966_s10 = smov [#allocation2]   ;;  %s967_s13 = smov [#allocation5]  }
  0x10   : > { %s198_s11 = sshll.u32 %s966_s10, 4  ;;  %p771_p11 = pneg %p1058_p10  ;;  %s199_s11 = int_to_ptr.vmem [resolvable:$true] %s198_s11 }
  0x11   : > { %s214_s14 = sshll.u32 %s967_s13, 4  ;;  %s855_s15 = scalar_lea.vmem %s199_s11, 1024  ;;  %s215_s14 = int_to_ptr.vmem [resolvable:$true] %s214_s14 }
  0x12   : > { %p1066_p12 = pnand %p1189_p9, %p771_p11  ;;  %p856_p0 = scmp.ne.s32.totalorder %s199_s11, %s855_s15 }
  0x13   : > { %p863_p3 = scmp.lt.s32.totalorder %s199_s11, %s199_s11  ;;  %p864_p4 = scmp.lt.s32.totalorder %s855_s15, %s855_s15 }
  0x14   : > { %p846_p13 = pneg %p1066_p12 }
  0x15   : > { %p865_p7 = por %p864_p4, %p863_p3 }
  0x16   : > { %p858_p1 = pnand %p856_p0, %p846_p13 }
  0x18   : > { %p859_p2 = pneg %p858_p1 }
  0x1a   : > { %p866_p8 = pnand %p865_p7, %p859_p2 }
  0x1c   : > { %869 = shalt.err (!%p866_p8)
}
  0x1d   : > { %s968_s16 = smov 64   ;;  %s969_s17 = smov 4  }
  0x1e   : > { %774 = dma.hbm_to_vmem [thread:$0]  (!%p1066_p12), %s1184_s2, 1024, %s199_s11, [#allocation3], %s968_s16, %s968_s16, %s969_s17  }
  0x1f   : > { %s881_s20 = scalar_lea.vmem %s215_s14, 1024  ;;  %p889_p9 = scmp.lt.s32.totalorder %s215_s14, %s215_s14 }
  0x20   : > { %p882_p11 = scmp.ne.s32.totalorder %s215_s14, %s881_s20  ;;  %p890_p6 = scmp.lt.s32.totalorder %s881_s20, %s881_s20 }
  0x22   : > { %p884_p0 = pnand %p882_p11, %p846_p13  ;;  %p891_p3 = por %p890_p6, %p889_p9 }
  0x24   : > { %p885_p1 = pneg %p884_p0 }
  0x26   : > { %p892_p2 = pnand %p891_p3, %p885_p1 }
  0x28   : > { %895 = shalt.err (!%p892_p2)
}
  0x29   : > { %777 = dma.hbm_to_vmem [thread:$0]  (!%p1066_p12), %s1186_s4, 1024, %s215_s14, [#allocation6], %s968_s16, %s968_s16, %s969_s17  }
  0x2a   : > { %240 = sbr.rel (%p1058_p10) target bundleno = 791 (0x317), region = 44  ;;  %p1194_p4 = scmp.eq.s32.totalorder (!%p1058_p10), %s1030_s25, 0 }
  0x2f   : > { %939 = dma.done.wait (%p1194_p4), [#allocation3], 1024   ;;  %p1195_p13 = pmov %p1194_p4 }
  0x30   : > { %p1196_p7 = pmov %p1194_p4 }
  0x31   : > { %941 = vsyncadd (%p1195_p13), [#allocation3], 4294966272 }
  0x32   : > { %943 = dma.done.wait (%p1196_p7), [#allocation6], 1024   ;;  %p1197_p6 = pmov %p1194_p4 }
  0x33   : > { %p273_p9 = scmp.lt.s32.totalorder %s1030_s25, 1  ;;  %v970_v0 = vmov 0   ;;  %v971_v1 = vmov 0.0   ;;  %vm972_vm0 = vmmov 0   ;;  %v827_v3 = vld [vmem:[%s1183_s1] sm:$0xff]   ;;  %v828_v4 = vld [vmem:[#allocation2 + $0x38] sm:$0xff]   ;;  %v295_v11 = vlaneseq }
  0x34   : > { %945 = vsyncadd (%p1197_p6), [#allocation6], 4294966272  ;;  %826 = vset.pattern.permute.xlu0 %v970_v0  ;;  %715 = vmatprep.subr.bf16.mxu0 %v971_v1  ;;  %v829_v5 = vld [vmem:[#allocation2 + $0x30] sm:$0xff]   ;;  %v830_v6 = vld [vmem:[#allocation2 + $0x28] sm:$0xff]   ;;  %vm311_vm2 = vcmask 130048   ;;  %s270_s17 = sand.u32 1, %s956_s22  }
  0x35   : > { %s274_s29 = scalar_select %p273_p9, %s1030_s25, 1  ;;  %721 = vmatprep.subr.bf16.mxu1 %v971_v1  ;;  %717 = vmatprep.mubr.msk.bf16.mxu0 %vm972_vm0, %v971_v1  ;;  %v831_v7 = vld [vmem:[#allocation2 + $0x20] sm:$0xff]   ;;  %v832_v8 = vld [vmem:[#allocation2 + $0x18] sm:$0xff]   ;;  %v833_v9 = vld [vmem:[#allocation2 + $0x10] sm:$0xff]   ;;  %v296_v12 = vand.u32 127, %v295_v11 }
  0x36   : > { %737 = vmatprep.mubr.msk.bf16.mxu1 %vm972_vm0, %v971_v1  ;;  %716 = vmatpush3.bf16.msra.mxu0 %v827_v3  ;;  %v834_v10 = vld [vmem:[#allocation2 + $0x8] sm:$0xff]   ;;  %v835_v16 = vld [vmem:[#allocation2] sm:$0xff]   ;;  %v836_v17 = vld [vmem:[#allocation5 + $0x38] sm:$0xff]   ;;  %s669_s18 = sshll.u32 %s270_s17, 2  ;;  %s692_s26 = sshll.u32 %s1030_s25, 6 }
  0x37   : > { %s670_s9 = sshll.u32 %s274_s29, 3  ;;  %722 = vmatpush3.bf16.msra.mxu1 %v828_v4  ;;  %741 = vmatprep.subr.bf16.mxu0 %v971_v1  ;;  %v837_v18 = vld [vmem:[#allocation5 + $0x30] sm:$0xff]   ;;  %v838_v19 = vld [vmem:[#allocation5 + $0x28] sm:$0xff]   ;;  %v839_v20 = vld [vmem:[#allocation5 + $0x20] sm:$0xff]   ;;  %s272_s28 = scalar_lea.vmem [#allocation7], %s669_s18 }
  0x38   : > { %s276_s12 = scalar_lea.vmem %s1182_s0, %s670_s9  ;;  %723 = vmatprep.subr.bf16.mxu1 %v971_v1  ;;  %v840_v21 = vld [vmem:[#allocation5 + $0x18] sm:$0xff]   ;;  %v841_v22 = vld [vmem:[#allocation5 + $0x10] sm:$0xff]   ;;  %v842_v28 = vld [vmem:[#allocation5 + $0x8] sm:$0xff]   ;;  %s580_s29 = sshll.u32 %s272_s28, 4  ;;  %s1143_s29 = int_to_ptr.vmem [resolvable:$true] %s580_s29 }
  0x39   : > { %v294_v2 = vld [vmem:[%s276_s12] sm:$0xff]  ;;  %s1141_s11 = scalar_lea.hbm %s1188_s6, %s692_s26  ;;  %s567_s12 = scalar_lea.sflag [#allocation4], %s270_s17 }
  0x3a   : > { %298 = vperm.xlu0 %826, %v294_v2   ;;  %v843_v29 = vld [vmem:[#allocation5] sm:$0xff]   ;;  %s896_s25 = scalar_lea.vmem %s1143_s29, 64  ;;  %s973_s13 = smov [#allocation7]  }
  0x3b   : > { %724 = vmatpush3.bf16.msra.mxu1 %v829_v5  ;;  %v673_v30 = vld [vmem:[%s1185_s3] ss:$0 sm:$0xff]  ;;  %p897_p10 = scmp.ne.s32.totalorder %s1143_s29, %s896_s25  ;;  %s900_s14 = sshll.u32 %s973_s13, 4  ;;  %s901_s14 = int_to_ptr.vmem [resolvable:$false] %s900_s14 }
  0x3c   : > { %725 = vmatprep.subr.bf16.mxu1 %v971_v1  ;;  %v682_v38 = vld [vmem:[%s1187_s5] ss:$0 sm:$0xff]  ;;  %s902_s15 = scalar_lea.vmem %s901_s14, 128  ;;  %p903_p11 = scmp.lt.s32.totalorder %s1143_s29, %s901_s14 }
  0x3d   : > { %p898_p12 = pnand %p897_p10, %p1047_p5  ;;  %p904_p0 = scmp.lt.s32.totalorder %s902_s15, %s896_s25 }
  0x3f   : > { %726 = vmatpush3.bf16.msra.mxu1 %v830_v6  ;;  %p899_p8 = pneg %p898_p12  ;;  %p905_p1 = por %p904_p0, %p903_p11 }
  0x40   : > { %727 = vmatprep.subr.bf16.mxu1 %v971_v1 }
  0x41   : > { %p906_p3 = pnand %p905_p1, %p899_p8 }
  0x43   : > { %728 = vmatpush3.bf16.msra.mxu1 %v831_v7 }
  0x44   : > { %729 = vmatprep.subr.bf16.mxu1 %v971_v1 }
  0x47   : > { %730 = vmatpush3.bf16.msra.mxu1 %v832_v8 }
  0x48   : > { %731 = vmatprep.subr.bf16.mxu1 %v971_v1 }
  0x4b   : > { %732 = vmatpush3.bf16.msra.mxu1 %v833_v9 }
  0x4c   : > { %733 = vmatprep.subr.bf16.mxu1 %v971_v1 }
  0x4f   : > { %734 = vmatpush3.bf16.msra.mxu1 %v834_v10 }
  0x50   : > { %735 = vmatprep.subr.bf16.mxu1 %v971_v1 }
  0x53   : > { %736 = vmatpush3.bf16.msra.mxu1 %v835_v16 }
  0xb5   : > { %v299_v13 = vpop.permute.xlu0 %298 }
  0xb6   : > { %vm300_vm1 = vcmp.eq.s32.totalorder %v299_v13, %v296_v12 }
  0xb7   : > { %v301_v14 = vsel %vm300_vm1, 1.0, %v971_v1 }
  0xb8   : > { %v302_v15 = vpack.c.bf16 %v301_v14, %v301_v14 }
  0xba   : > { %718 = vmatmul.mubr.msk.bf16.vlgmr.msra.gmra.mxu0 %vm311_vm2, %v302_v15 }
  0xbb   : > { %757 = vmatprep.mubr.msk.bf16.mxu0 %vm972_vm0, %v971_v1  ;;  %742 = vmatpush3.bf16.msra.mxu0 %v836_v17 }
  0xbc   : > { %743 = vmatprep.subr.bf16.mxu0 %v971_v1 }
  0xbf   : > { %744 = vmatpush3.bf16.msra.mxu0 %v837_v18 }
  0xc0   : > { %745 = vmatprep.subr.bf16.mxu0 %v971_v1 }
  0xc3   : > { %746 = vmatpush3.bf16.msra.mxu0 %v838_v19 }
  0xc4   : > { %747 = vmatprep.subr.bf16.mxu0 %v971_v1 }
  0xc7   : > { %748 = vmatpush3.bf16.msra.mxu0 %v839_v20 }
  0xc8   : > { %749 = vmatprep.subr.bf16.mxu0 %v971_v1 }
  0xcb   : > { %750 = vmatpush3.bf16.msra.mxu0 %v840_v21 }
  0xcc   : > { %751 = vmatprep.subr.bf16.mxu0 %v971_v1 }
  0xcf   : > { %752 = vmatpush3.bf16.msra.mxu0 %v841_v22 }
  0xd0   : > { %753 = vmatprep.subr.bf16.mxu0 %v971_v1 }
  0xd3   : > { %754 = vmatpush3.bf16.msra.mxu0 %v842_v28 }
  0xd4   : > { %755 = vmatprep.subr.bf16.mxu0 %v971_v1 }
  0xd7   : > { %756 = vmatpush3.bf16.msra.mxu0 %v843_v29 }
 0x17a   : > { %v349_v23 = vpop.f32.mrf.mxu0 }
 0x17b   : > { %v355_v24 = vpack.c.bf16 %v349_v23, %v349_v23 }
 0x17c   : > { %v719_v25 = vpop.f32.mrf.mxu0 }
 0x17d   : > { %738 = vmatmul.mubr.bf16.vlgmr.msra.gmra.mxu1 %v355_v24 }
 0x17e   : > { %v352_v26 = vpop.f32.mrf.mxu0 }
 0x180   : > { %v720_v27 = vpop.f32.mrf.mxu0 }
 0x23d   : > { %v461_v31 = vpop.f32.mrf.mxu1 }
 0x23e   : > { %v462_v32 = vadd.f32 %v673_v30, %v461_v31 }
 0x23f   : > { %v739_v33 = vpop.f32.mrf.mxu1 }
 0x240   : > { %v467_v34 = vmax.f32 %v462_v32, 0.0 }
 0x241   : > { %v464_v35 = vpop.f32.mrf.mxu1 }
 0x242   : > { %v468_v36 = vpack.c.bf16 %v467_v34, %v467_v34 }
 0x243   : > { %v740_v37 = vpop.f32.mrf.mxu1 }
 0x244   : > { %758 = vmatmul.mubr.bf16.vlgmr.msra.gmra.mxu0 %v468_v36 }
 0x304   : > { %v558_v39 = vpop.f32.mrf.mxu0 }
 0x305   : > { %v559_v40 = vadd.f32 %v682_v38, %v558_v39 }
 0x306   : > { %v759_v41 = vpop.f32.mrf.mxu0 }
 0x307   : > { %v564_v42 = vpack.c.bf16 %v559_v40, %v559_v40 }
 0x308   : > { %v561_v43 = vpop.f32.mrf.mxu0 }
 0x309   : > { %565 = vst [vmem:[%s272_s28] sm:$0xf] %v564_v42 }
 0x30a   : > { %v760_v44 = vpop.f32.mrf.mxu0 }
 0x30b   : > { %909 = shalt.err (!%p906_p3)
}
 0x30c   : > { %s910_s16 = scalar_lea.hbm %s1141_s11, 64  ;;  %s914_s19 = scalar_lea.hbm %s1188_s6, 128 }
 0x30d   : > { %p911_p2 = scmp.ne.s32.totalorder %s1141_s11, %s910_s16  ;;  %p915_p7 = scmp.lt.s32.totalorder %s1141_s11, %s1188_s6 }
 0x30e   : > { %p916_p6 = scmp.lt.s32.totalorder %s914_s19, %s910_s16 }
 0x30f   : > { %p912_p4 = pnand %p911_p2, %p1047_p5 }
 0x310   : > { %p917_p9 = por %p916_p6, %p915_p7 }
 0x311   : > { %p913_p13 = pneg %p912_p4 }
 0x313   : > { %p918_p10 = pnand %p917_p9, %p913_p13 }
 0x315   : > { %921 = shalt.err (!%p918_p10)
}
 0x316   : > { %769 = dma.vmem_to_hbm [thread:$0]  (%p1047_p5), %s1143_s29, 64, %s1141_s11, %s567_s12  }
 0x317 PF: > { %p786_p12 = scmp.ge.s32.totalorder %s964_s24, 2  ;;  %s592_s28 = sand.u32 1, %s952_s21  }
 0x318   : > { %p1198_p8 = scmp.ne.s32.totalorder %s1191_s8, 0  ;;  %s593_s9 = scalar_lea.sflag [#allocation4], %s592_s28 }
 0x31a   : > { %p779_p11 = pnand %p786_p12, %p1198_p8 }
 0x31c   : > { %p780_p0 = pneg %p779_p11 }
 0x31e   : > { %947 = dma.done.wait (%p780_p0), %s593_s9, 64  }
 0x31f   : > { %949 = vsyncadd (%p780_p0), %s593_s9, 4294967232  ;;  %p18_p1 = scmp.ge.s32.totalorder %s1034_s27, 4   ;;  %s1199_s21 = smov %s956_s22 }
 0x320   : > { %s1200_s22 = smov %s960_s23  ;;  %s1201_s23 = smov %s1045_s30 }
 0x321   : > { %s1202_s24 = smov %s1034_s27  ;;  %20 = sbr.rel (!%p18_p1) target bundleno = 5 (0x5), region = 88 }
 0x326   :  { %598 = vsyncpa [#allocation3], 1 }
 0x327   :  { %600 = vsyncpa [#allocation3 + $0x1], 1 }
 0x328   :  { %601 = vsyncpa [#allocation6], 1 }
 0x329   :  { %602 = vsyncpa [#allocation4], 1 }
 0x32a   :  { %604 = vsyncpa [#allocation4 + $0x1], 1 }

</bundles_post_ra>
